<compile_context>
chip_gen: v5e
topology: v5e:2x2
jax: 0.10.0
libtpu: 0.0.40
codegen_flags: <defaults>
</compile_context>

<pallas_src>
import jax
import jax.numpy as jnp
from jax.experimental import pallas as pl
from jax.experimental.pallas import tpu as pltpu


def _round_up(n, m):
    return ((n + m - 1) // m) * m


def _leaky_relu(v):
    return jnp.where(v > 0, v, 0.2 * v)


# --------------------------- kernels ---------------------------

def _kernel_blockdiag(x_ref, e_ref, w1x_ref, w1e_ref, b1_ref,
                      w2_ref, b2_ref, wo_ref, bo_ref, out_ref):
    """Both heads fused: layer-1 fused along N, layers 2/3 block-diagonal.
    Three MXU passes, no lane-crossing splits, one lane-dense output store."""
    x = x_ref[...].astype(jnp.bfloat16)
    e = e_ref[...].astype(jnp.bfloat16)
    h1 = jnp.dot(x, w1x_ref[...], preferred_element_type=jnp.float32)
    h1 = h1 + jnp.dot(e, w1e_ref[...], preferred_element_type=jnp.float32)
    h1 = _leaky_relu(h1 + b1_ref[...]).astype(jnp.bfloat16)
    h2 = jnp.dot(h1, w2_ref[...], preferred_element_type=jnp.float32)
    h2 = _leaky_relu(h2 + b2_ref[...]).astype(jnp.bfloat16)
    out = jnp.dot(h2, wo_ref[...], preferred_element_type=jnp.float32) + bo_ref[...]
    out_ref[...] = out.astype(out_ref.dtype)


def _kernel_per_head(x_ref, e_ref, w1x_ref, w1e_ref, b1_ref,
                     f_w2_ref, f_b2_ref, f_wo_ref, f_bo_ref,
                     l_w2_ref, l_b2_ref, l_wo_ref, l_bo_ref, out_ref):
    """Per-head layers 2/3 (used when 2*mid_pad exceeds one MXU weight tile).
    mid_pad / out_pad are 128-multiples, so the h1 split and both output
    stores are lane-aligned (unmasked vst)."""
    mid_p = f_w2_ref.shape[0]
    out_p = f_wo_ref.shape[1]
    x = x_ref[...].astype(jnp.bfloat16)
    e = e_ref[...].astype(jnp.bfloat16)
    h1 = jnp.dot(x, w1x_ref[...], preferred_element_type=jnp.float32)
    h1 = h1 + jnp.dot(e, w1e_ref[...], preferred_element_type=jnp.float32)
    h1 = _leaky_relu(h1 + b1_ref[...]).astype(jnp.bfloat16)

    def head(h, w2_ref, b2_ref, wo_ref, bo_ref):
        h2 = jnp.dot(h, w2_ref[...], preferred_element_type=jnp.float32)
        h2 = _leaky_relu(h2 + b2_ref[...]).astype(jnp.bfloat16)
        return jnp.dot(h2, wo_ref[...], preferred_element_type=jnp.float32) + bo_ref[...]

    first = head(h1[:, :mid_p], f_w2_ref, f_b2_ref, f_wo_ref, f_bo_ref)
    last = head(h1[:, mid_p:], l_w2_ref, l_b2_ref, l_wo_ref, l_bo_ref)
    out_ref[:, :out_p] = first.astype(out_ref.dtype)
    out_ref[:, out_p:] = last.astype(out_ref.dtype)


# --------------------------- wrapper ---------------------------

def img2text_with_exp(x, params, exp=None, mask=None, *, tb=None,
                      out_dtype=jnp.float32):
    """Pallas implementation of IMG2TEXTwithEXP.forward. Returns (first, last)."""
    B, E = x.shape
    X = int(params["null_exp"].shape[-1])
    f_p, l_p = params["first"], params["last"]
    mid = int(f_p["w2"].shape[0])
    out_dim = int(f_p["wo"].shape[-1])

    mid_p = _round_up(mid, 128)
    out_p = _round_up(out_dim, 128)
    N1 = 2 * mid_p        # fused layer-1 output width (both heads)
    NO = 2 * out_p        # fused output slab width (both heads)

    # Block-diag fusion of layers 2/3 only when 2*mid_pad fits one MXU weight
    # tile (256 on v6e/v7x); otherwise the zero blocks would cost real FLOPs.
    use_blockdiag = (N1 <= 256)

    # ---- producer-side mask/null blend (fused XLA elementwise, tiny [B,X]) ----
    null = params["null_exp"].reshape(1, X).astype(jnp.float32)
    if exp is None:
        exp = null
    exp = jnp.broadcast_to(jnp.asarray(exp, jnp.float32), (B, X))
    if mask is None:
        mask = jnp.ones((B, 1), jnp.float32)
    else:
        mask = jnp.asarray(mask, jnp.float32).reshape(B, 1)
    e = (exp * mask + null * (1.0 - mask)).astype(jnp.bfloat16)

    # ---- weight packing: pad to 128-lane multiples, bf16 mats, f32 biases.
    # Under jit with constant params this is hoisted / done once. ----
    def pad2(w, r, c):
        return jnp.pad(jnp.asarray(w, jnp.float32),
                       ((0, r - w.shape[0]), (0, c - w.shape[1])))

    f_w1 = jnp.asarray(f_p["w1"], jnp.float32)
    l_w1 = jnp.asarray(l_p["w1"], jnp.float32)
    w1x = jnp.concatenate([pad2(f_w1[:E], E, mid_p),
                           pad2(l_w1[:E], E, mid_p)], axis=1).astype(jnp.bfloat16)
    w1e = jnp.concatenate([pad2(f_w1[E:], X, mid_p),
                           pad2(l_w1[E:], X, mid_p)], axis=1).astype(jnp.bfloat16)
    b1 = jnp.concatenate([pad2(f_p["b1"].reshape(1, mid), 1, mid_p),
                          pad2(l_p["b1"].reshape(1, mid), 1, mid_p)],
                         axis=1).astype(jnp.float32)

    f_w2 = pad2(f_p["w2"], mid_p, mid_p).astype(jnp.bfloat16)
    l_w2 = pad2(l_p["w2"], mid_p, mid_p).astype(jnp.bfloat16)
    f_wo = pad2(f_p["wo"], mid_p, out_p).astype(jnp.bfloat16)
    l_wo = pad2(l_p["wo"], mid_p, out_p).astype(jnp.bfloat16)
    f_b2 = pad2(f_p["b2"].reshape(1, mid), 1, mid_p).astype(jnp.float32)
    l_b2 = pad2(l_p["b2"].reshape(1, mid), 1, mid_p).astype(jnp.float32)
    f_bo = pad2(f_p["bo"].reshape(1, out_dim), 1, out_p).astype(jnp.float32)
    l_bo = pad2(l_p["bo"].reshape(1, out_dim), 1, out_p).astype(jnp.float32)

    if use_blockdiag:
        def block_diag(a, b):
            za = jnp.zeros((a.shape[0], b.shape[1]), a.dtype)
            zb = jnp.zeros((b.shape[0], a.shape[1]), b.dtype)
            return jnp.concatenate([jnp.concatenate([a, za], axis=1),
                                    jnp.concatenate([zb, b], axis=1)], axis=0)
        w2_bd = block_diag(f_w2, l_w2)                       # [N1, N1]
        wo_bd = block_diag(f_wo, l_wo)                       # [N1, NO]
        b2_bd = jnp.concatenate([f_b2, l_b2], axis=1)        # [1, N1]
        bo_bd = jnp.concatenate([f_bo, l_bo], axis=1)        # [1, NO]

    # ---- VMEM budget & batch tile selection (per TensorCore) ----
    x_item = jnp.dtype(x.dtype).itemsize
    out_item = jnp.dtype(out_dtype).itemsize
    if use_blockdiag:
        weight_bytes = ((E + X + N1) * N1 + N1 * NO) * 2 + (2 * N1 + NO) * 4
    else:
        weight_bytes = (((E + X) * N1 + 2 * mid_p * mid_p + 2 * mid_p * out_p) * 2
                        + (2 * N1 + 2 * out_p) * 4)

    try:
        vmem_cap = int(pltpu.get_tpu_info().vmem_capacity_bytes)   # per-core
    except Exception:
        vmem_cap = 64 << 20   # conservative: v7x per-TensorCore VMEM
    budget = max(vmem_cap - (8 << 20), 24 << 20)   # headroom for Mosaic scratch

    def footprint(t):
        # 2x weights (default double-buffered BlockSpecs; constant index_map
        # means no re-DMA, just the extra buffer), double-buffered act/out
        # tiles, plus in-kernel f32 temporaries.
        act = 2 * t * (E * x_item + X * 2) + 2 * t * NO * out_item
        tmp = t * N1 * 4 * 3 + t * NO * 4
        return 2 * weight_bytes + act + tmp + (4 << 20)

    if tb is None:
        tb = 512 if B >= 512 else max(16, _round_up(B, 16))
    tb = max(16, _round_up(int(tb), 16))
    while tb > 16 and footprint(tb) > budget:
        tb = max(16, _round_up(tb // 2, 16))
    TB = tb

    Bp = _round_up(B, TB)
    x_in = x if Bp == B else jnp.pad(x, ((0, Bp - B), (0, 0)))
    e_in = e if Bp == B else jnp.pad(e, ((0, Bp - B), (0, 0)))
    grid = (Bp // TB,)

    vmem_limit = int(min(budget, max(footprint(TB), 16 << 20)))

    # ---- BlockSpecs: activations/outputs pipelined over the batch grid,
    # grid-invariant weights with constant index_maps (resident in VMEM). ----
    def fixed(shape):
        return pl.BlockSpec(shape, lambda i: (0, 0))

    act_specs = [
        pl.BlockSpec((TB, E), lambda i: (i, 0)),   # x tile
        pl.BlockSpec((TB, X), lambda i: (i, 0)),   # blended exp tile
        fixed((E, N1)), fixed((X, N1)), fixed((1, N1)),   # fused layer-1 w/b
    ]
    if use_blockdiag:
        kernel = _kernel_blockdiag
        w_specs = [fixed((N1, N1)), fixed((1, N1)),
                   fixed((N1, NO)), fixed((1, NO))]
        operands = (x_in, e_in, w1x, w1e, b1, w2_bd, b2_bd, wo_bd, bo_bd)
    else:
        kernel = _kernel_per_head
        w_specs = [fixed((mid_p, mid_p)), fixed((1, mid_p)),
                   fixed((mid_p, out_p)), fixed((1, out_p)),
                   fixed((mid_p, mid_p)), fixed((1, mid_p)),
                   fixed((mid_p, out_p)), fixed((1, out_p))]
        operands = (x_in, e_in, w1x, w1e, b1,
                    f_w2, f_b2, f_wo, f_bo, l_w2, l_b2, l_wo, l_bo)
    out_specs = pl.BlockSpec((TB, NO), lambda i: (i, 0))

    out = pl.pallas_call(
        kernel,
        out_shape=jax.ShapeDtypeStruct((Bp, NO), out_dtype),
        grid_spec=pltpu.PrefetchScalarGridSpec(
            num_scalar_prefetch=0,
            grid=grid,
            in_specs=act_specs + w_specs,
            out_specs=out_specs,
        ),
        compiler_params=pltpu.CompilerParams(
            # NOTE(v7x): "parallel" megacore-shards the batch axis; resident
            # weights are duplicated per TensorCore, so the footprint/limit
            # above are sized per-core against get_tpu_info() capacity.
            dimension_semantics=("parallel",),
            vmem_limit_bytes=vmem_limit,
        ),
    )(*operands)

    # Wrapper splits the lane-dense slab back into (first, last) and drops
    # lane/batch padding.
    return out[:B, :out_dim], out[:B, out_p:out_p + out_dim]


# --------------------------- test harness ---------------------------

def _init_mlp_params(key, in_dim, mid_dim, out_dim):
    k1, k2, k3, k4, k5, k6 = jax.random.split(key, 6)
    s = 0.05
    return {
        "w1": s * jax.random.normal(k1, (in_dim, mid_dim), jnp.float32),
        "b1": s * jax.random.normal(k2, (1, mid_dim), jnp.float32),
        "w2": s * jax.random.normal(k3, (mid_dim, mid_dim), jnp.float32),
        "b2": s * jax.random.normal(k4, (1, mid_dim), jnp.float32),
        "wo": s * jax.random.normal(k5, (mid_dim, out_dim), jnp.float32),
        "bo": s * jax.random.normal(k6, (1, out_dim), jnp.float32),
    }


def _ref_forward(x, exp, mask, params):
    # Pure-JAX reference mirroring the PyTorch forward (eval mode), with the
    # same bf16-operand / f32-accumulation precision as the kernel.
    mask = mask.reshape(-1, 1).astype(jnp.float32)
    null = params["null_exp"].reshape(1, -1).astype(jnp.float32)
    e = exp.astype(jnp.float32) * mask + null * (1.0 - mask)
    xc = jnp.concatenate([x.astype(jnp.float32), e], axis=-1).astype(jnp.bfloat16)

    def dot(a, w):
        return jnp.dot(a, w.astype(jnp.bfloat16),
                       preferred_element_type=jnp.float32)

    def lrelu(v):
        return jnp.where(v > 0, v, 0.2 * v)

    def mlp(p):
        h = lrelu(dot(xc, p["w1"]) + p["b1"]).astype(jnp.bfloat16)
        h = lrelu(dot(h, p["w2"]) + p["b2"]).astype(jnp.bfloat16)
        return dot(h, p["wo"]) + p["bo"]

    return mlp(params["first"]), mlp(params["last"])


if __name__ == "__main__":
    root = jax.random.PRNGKey(0)
    ks = jax.random.split(root, 10)

    # --- Test A: block-diagonal fused path (mid_pad=128 -> 2*mid_pad=256),
    #     multi-tile grid with a padded batch tail (B=40, tb=16 -> grid=(3,)).
    B, E, X, MID, OUT = 40, 32, 16, 32, 32
    x = jax.random.normal(ks[0], (B, E), jnp.float32)
    exp = jax.random.normal(ks[1], (B, X), jnp.float32)
    mask = (jax.random.uniform(ks[2], (B,)) > 0.3).astype(jnp.float32)
    params = {
        "null_exp": 0.05 * jax.random.normal(ks[3], (X,), jnp.float32),
        "first": _init_mlp_params(ks[4], E + X, MID, OUT),
        "last": _init_mlp_params(ks[5], E + X, MID, OUT),
    }

    first, last = img2text_with_exp(x, params, exp=exp, mask=mask, tb=16)
    first = jax.block_until_ready(first)
    last = jax.block_until_ready(last)
    rf, rl = _ref_forward(x, exp, mask, params)
    assert first.shape == (B, OUT) and last.shape == (B, OUT)
    assert jnp.allclose(first, rf, rtol=2e-2, atol=5e-3), \
        float(jnp.max(jnp.abs(first - rf)))
    assert jnp.allclose(last, rl, rtol=2e-2, atol=5e-3), \
        float(jnp.max(jnp.abs(last - rl)))

    # Default-arg path: exp=None, mask=None (null_exp broadcast, mask of ones).
    f2, l2 = img2text_with_exp(x, params)
    f2 = jax.block_until_ready(f2)
    l2 = jax.block_until_ready(l2)
    rf2, rl2 = _ref_forward(
        x, jnp.broadcast_to(params["null_exp"].reshape(1, X), (B, X)),
        jnp.ones((B,), jnp.float32), params)
    assert jnp.allclose(f2, rf2, rtol=2e-2, atol=5e-3)
    assert jnp.allclose(l2, rl2, rtol=2e-2, atol=5e-3)

    # --- Test B: per-head path (mid_pad=256 -> 2*mid_pad=512 > one MXU tile),
    #     with out_dim not a multiple of 128 (exercises lane-padded outputs).
    B2, MID2, OUT2 = 16, 144, 40
    x2 = jax.random.normal(ks[6], (B2, E), jnp.float32)
    exp2 = jax.random.normal(ks[7], (B2, X), jnp.float32)
    mask2 = (jax.random.uniform(ks[8], (B2,)) > 0.5).astype(jnp.float32)
    params2 = {
        "null_exp": 0.05 * jax.random.normal(ks[9], (X,), jnp.float32),
        "first": _init_mlp_params(jax.random.fold_in(root, 1), E + X, MID2, OUT2),
        "last": _init_mlp_params(jax.random.fold_in(root, 2), E + X, MID2, OUT2),
    }
    f3, l3 = img2text_with_exp(x2, params2, exp=exp2, mask=mask2)
    f3 = jax.block_until_ready(f3)
    l3 = jax.block_until_ready(l3)
    rf3, rl3 = _ref_forward(x2, exp2, mask2, params2)
    assert f3.shape == (B2, OUT2) and l3.shape == (B2, OUT2)
    assert jnp.allclose(f3, rf3, rtol=2e-2, atol=5e-3), \
        float(jnp.max(jnp.abs(f3 - rf3)))
    assert jnp.allclose(l3, rl3, rtol=2e-2, atol=5e-3), \
        float(jnp.max(jnp.abs(l3 - rl3)))

    print("KERNEL_OK")
</pallas_src>

<mosaic_0001>
module attributes {stable_mosaic.version = 11 : i64} {
  func.func @_kernel_blockdiag(%arg0: i32, %arg1: memref<16x32xf32, #tpu.memory_space<vmem>>, %arg2: memref<16x16xbf16, #tpu.memory_space<vmem>>, %arg3: memref<32x256xbf16, #tpu.memory_space<vmem>>, %arg4: memref<16x256xbf16, #tpu.memory_space<vmem>>, %arg5: memref<1x256xf32, #tpu.memory_space<vmem>>, %arg6: memref<256x256xbf16, #tpu.memory_space<vmem>>, %arg7: memref<1x256xf32, #tpu.memory_space<vmem>>, %arg8: memref<256x256xbf16, #tpu.memory_space<vmem>>, %arg9: memref<1x256xf32, #tpu.memory_space<vmem>>, %arg10: memref<16x256xf32, #tpu.memory_space<vmem>>) attributes {dimension_semantics = [#tpu.dimension_semantics<parallel>], iteration_bounds = array<i64: 3>, scalar_prefetch = 0 : i64, scratch_operands = 0 : i64, tpu.core_type = #tpu.core_type<tc>, window_params = [{transform_indices = @transform_0, window_bounds = array<i64: 16, 32>}, {transform_indices = @transform_1, window_bounds = array<i64: 16, 16>}, {pipeline_mode = #tpu.pipeline_mode<synchronous>, transform_indices = @transform_2, window_bounds = array<i64: 32, 256>}, {pipeline_mode = #tpu.pipeline_mode<synchronous>, transform_indices = @transform_3, window_bounds = array<i64: 16, 256>}, {pipeline_mode = #tpu.pipeline_mode<synchronous>, transform_indices = @transform_4, window_bounds = array<i64: 1, 256>}, {pipeline_mode = #tpu.pipeline_mode<synchronous>, transform_indices = @transform_5, window_bounds = array<i64: 256, 256>}, {pipeline_mode = #tpu.pipeline_mode<synchronous>, transform_indices = @transform_6, window_bounds = array<i64: 1, 256>}, {pipeline_mode = #tpu.pipeline_mode<synchronous>, transform_indices = @transform_7, window_bounds = array<i64: 256, 256>}, {pipeline_mode = #tpu.pipeline_mode<synchronous>, transform_indices = @transform_8, window_bounds = array<i64: 1, 256>}, {transform_indices = @transform_9, window_bounds = array<i64: 16, 256>}]} {
    %c0 = arith.constant 0 : index
    %c0_0 = arith.constant 0 : index
    %0 = vector.load %arg1[%c0, %c0_0] : memref<16x32xf32, #tpu.memory_space<vmem>>, vector<16x32xf32>
    %1 = arith.truncf %0 : vector<16x32xf32> to vector<16x32xbf16>
    %c0_1 = arith.constant 0 : index
    %c0_2 = arith.constant 0 : index
    %2 = vector.load %arg2[%c0_1, %c0_2] : memref<16x16xbf16, #tpu.memory_space<vmem>>, vector<16x16xbf16>
    %c0_3 = arith.constant 0 : index
    %c0_4 = arith.constant 0 : index
    %3 = vector.load %arg3[%c0_3, %c0_4] : memref<32x256xbf16, #tpu.memory_space<vmem>>, vector<32x256xbf16>
    %cst = arith.constant dense<0.000000e+00> : vector<16x256xf32>
    %4 = tpu.matmul %1, %3, %cst {dimension_numbers = #tpu.dot_dimension_numbers<[1], [0], [0], [1], [0, 0, 1, 1], [], []>} : vector<16x32xbf16>, vector<32x256xbf16>, vector<16x256xf32> -> vector<16x256xf32>
    %c0_5 = arith.constant 0 : index
    %c0_6 = arith.constant 0 : index
    %5 = vector.load %arg4[%c0_5, %c0_6] : memref<16x256xbf16, #tpu.memory_space<vmem>>, vector<16x256xbf16>
    %cst_7 = arith.constant dense<0.000000e+00> : vector<16x256xf32>
    %6 = tpu.matmul %2, %5, %cst_7 {dimension_numbers = #tpu.dot_dimension_numbers<[1], [0], [0], [1], [0, 0, 1, 1], [], []>} : vector<16x16xbf16>, vector<16x256xbf16>, vector<16x256xf32> -> vector<16x256xf32>
    %7 = arith.addf %4, %6 : vector<16x256xf32>
    %c0_8 = arith.constant 0 : index
    %c0_9 = arith.constant 0 : index
    %8 = vector.load %arg5[%c0_8, %c0_9] : memref<1x256xf32, #tpu.memory_space<vmem>>, vector<1x256xf32>
    %9 = vector.broadcast %8 : vector<1x256xf32> to vector<16x256xf32>
    %10 = arith.addf %7, %9 : vector<16x256xf32>
    %cst_10 = arith.constant 0.000000e+00 : f32
    %11 = vector.broadcast %cst_10 : f32 to vector<16x256xf32>
    %12 = arith.cmpf ogt, %10, %11 : vector<16x256xf32>
    %cst_11 = arith.constant 2.000000e-01 : f32
    %13 = vector.broadcast %cst_11 : f32 to vector<16x256xf32>
    %14 = arith.mulf %13, %10 : vector<16x256xf32>
    %15 = arith.select %12, %10, %14 : vector<16x256xi1>, vector<16x256xf32>
    %16 = arith.truncf %15 : vector<16x256xf32> to vector<16x256xbf16>
    %c0_12 = arith.constant 0 : index
    %c0_13 = arith.constant 0 : index
    %17 = vector.load %arg6[%c0_12, %c0_13] : memref<256x256xbf16, #tpu.memory_space<vmem>>, vector<256x256xbf16>
    %cst_14 = arith.constant dense<0.000000e+00> : vector<16x256xf32>
    %18 = tpu.matmul %16, %17, %cst_14 {dimension_numbers = #tpu.dot_dimension_numbers<[1], [0], [0], [1], [0, 0, 1, 1], [], []>} : vector<16x256xbf16>, vector<256x256xbf16>, vector<16x256xf32> -> vector<16x256xf32>
    %c0_15 = arith.constant 0 : index
    %c0_16 = arith.constant 0 : index
    %19 = vector.load %arg7[%c0_15, %c0_16] : memref<1x256xf32, #tpu.memory_space<vmem>>, vector<1x256xf32>
    %20 = vector.broadcast %19 : vector<1x256xf32> to vector<16x256xf32>
    %21 = arith.addf %18, %20 : vector<16x256xf32>
    %cst_17 = arith.constant 0.000000e+00 : f32
    %22 = vector.broadcast %cst_17 : f32 to vector<16x256xf32>
    %23 = arith.cmpf ogt, %21, %22 : vector<16x256xf32>
    %cst_18 = arith.constant 2.000000e-01 : f32
    %24 = vector.broadcast %cst_18 : f32 to vector<16x256xf32>
    %25 = arith.mulf %24, %21 : vector<16x256xf32>
    %26 = arith.select %23, %21, %25 : vector<16x256xi1>, vector<16x256xf32>
    %27 = arith.truncf %26 : vector<16x256xf32> to vector<16x256xbf16>
    %c0_19 = arith.constant 0 : index
    %c0_20 = arith.constant 0 : index
    %28 = vector.load %arg8[%c0_19, %c0_20] : memref<256x256xbf16, #tpu.memory_space<vmem>>, vector<256x256xbf16>
    %cst_21 = arith.constant dense<0.000000e+00> : vector<16x256xf32>
    %29 = tpu.matmul %27, %28, %cst_21 {dimension_numbers = #tpu.dot_dimension_numbers<[1], [0], [0], [1], [0, 0, 1, 1], [], []>} : vector<16x256xbf16>, vector<256x256xbf16>, vector<16x256xf32> -> vector<16x256xf32>
    %c0_22 = arith.constant 0 : index
    %c0_23 = arith.constant 0 : index
    %30 = vector.load %arg9[%c0_22, %c0_23] : memref<1x256xf32, #tpu.memory_space<vmem>>, vector<1x256xf32>
    %31 = vector.broadcast %30 : vector<1x256xf32> to vector<16x256xf32>
    %32 = arith.addf %29, %31 : vector<16x256xf32>
    %c0_24 = arith.constant 0 : index
    %c0_25 = arith.constant 0 : index
    %33 = vector.load %arg10[%c0_24, %c0_25] : memref<16x256xf32, #tpu.memory_space<vmem>>, vector<16x256xf32>
    tpu.vector_store %arg10[%c0_24, %c0_25], %32 {strides = array<i32>} : memref<16x256xf32, #tpu.memory_space<vmem>>, vector<16x256xf32>,
    return
  }
  func.func @transform_0(%arg0: i32) -> (i32, i32) {
    %c0_i32 = arith.constant 0 : i32
    %c0_i32_0 = arith.constant 0 : i32
    return %arg0, %c0_i32 : i32, i32
  }
  func.func @transform_1(%arg0: i32) -> (i32, i32) {
    %c0_i32 = arith.constant 0 : i32
    %c0_i32_0 = arith.constant 0 : i32
    return %arg0, %c0_i32 : i32, i32
  }
  func.func @transform_2(%arg0: i32) -> (i32, i32) {
    %c0_i32 = arith.constant 0 : i32
    %c0_i32_0 = arith.constant 0 : i32
    %c0_i32_1 = arith.constant 0 : i32
    return %c0_i32, %c0_i32_0 : i32, i32
  }
  func.func @transform_3(%arg0: i32) -> (i32, i32) {
    %c0_i32 = arith.constant 0 : i32
    %c0_i32_0 = arith.constant 0 : i32
    %c0_i32_1 = arith.constant 0 : i32
    return %c0_i32, %c0_i32_0 : i32, i32
  }
  func.func @transform_4(%arg0: i32) -> (i32, i32) {
    %c0_i32 = arith.constant 0 : i32
    %c0_i32_0 = arith.constant 0 : i32
    %c0_i32_1 = arith.constant 0 : i32
    return %c0_i32, %c0_i32_0 : i32, i32
  }
  func.func @transform_5(%arg0: i32) -> (i32, i32) {
    %c0_i32 = arith.constant 0 : i32
    %c0_i32_0 = arith.constant 0 : i32
    %c0_i32_1 = arith.constant 0 : i32
    return %c0_i32, %c0_i32_0 : i32, i32
  }
  func.func @transform_6(%arg0: i32) -> (i32, i32) {
    %c0_i32 = arith.constant 0 : i32
    %c0_i32_0 = arith.constant 0 : i32
    %c0_i32_1 = arith.constant 0 : i32
    return %c0_i32, %c0_i32_0 : i32, i32
  }
  func.func @transform_7(%arg0: i32) -> (i32, i32) {
    %c0_i32 = arith.constant 0 : i32
    %c0_i32_0 = arith.constant 0 : i32
    %c0_i32_1 = arith.constant 0 : i32
    return %c0_i32, %c0_i32_0 : i32, i32
  }
  func.func @transform_8(%arg0: i32) -> (i32, i32) {
    %c0_i32 = arith.constant 0 : i32
    %c0_i32_0 = arith.constant 0 : i32
    %c0_i32_1 = arith.constant 0 : i32
    return %c0_i32, %c0_i32_0 : i32, i32
  }
  func.func @transform_9(%arg0: i32) -> (i32, i32) {
    %c0_i32 = arith.constant 0 : i32
    %c0_i32_0 = arith.constant 0 : i32
    return %arg0, %c0_i32 : i32, i32
  }
}

</mosaic_0001>

<bundles_post_ra>
// kernel: tpu_custom_call.1
= control target key start
LH: loop header
LB: loop body
LE: loop exit
PB: predicated region body
PF: predicated region fallthrough
CT: control target
= control target key end

     0   :  { %s1961_s0 = inlined_call_operand.vmem [shape: f32[48,32], index: 0, kind: input, shape index: {}]   ;;  %s1962_s1 = inlined_call_operand.vmem [shape: bf16[48,16], index: 1, kind: input, shape index: {}]   ;;  %s1963_s2 = inlined_call_operand.vmem [shape: bf16[32,256], index: 2, kind: input, shape index: {}]   ;;  %s1964_s3 = inlined_call_operand.vmem [shape: bf16[16,256], index: 3, kind: input, shape index: {}]   ;;  %s1965_s4 = inlined_call_operand.vmem [shape: f32[1,256], index: 4, kind: input, shape index: {}]   ;;  %s1966_s5 = inlined_call_operand.hbm [shape: bf16[256,256], index: 5, kind: input, shape index: {}]   ;;  %s1967_s6 = inlined_call_operand.vmem [shape: f32[1,256], index: 6, kind: input, shape index: {}]   ;;  %s1968_s7 = inlined_call_operand.hbm [shape: bf16[256,256], index: 7, kind: input, shape index: {}]   ;;  %s1969_s8 = inlined_call_operand.vmem [shape: f32[1,256], index: 8, kind: input, shape index: {}]   ;;  %s1970_s9 = inlined_call_operand.hbm [shape: f32[48,256], index: 9, kind: output, shape index: {}]  }
   0x1   :  { %1971 = sst [smem:[#allocation11_spill]] %s1966_s5 }
   0x2   :  { %1972 = sst [smem:[#allocation12_spill]] %s1968_s7 }
   0x3   :  { %14 = vsyncpa [#allocation3], 0 }
   0x4   :  { %15 = vsyncpa [#allocation6], 0 }
   0x5   :  { %16 = vsyncpa [#allocation4], 0 }
   0x6   :  { %18 = vsyncpa [#allocation4 + $0x1], 0  ;;  %s1796_s30 = smov 0   ;;  %s1798_s10 = smov 0  }
   0x7   :  { %s1800_s11 = smov 0   ;;  %s1802_s12 = smov 0  }
   0x8 LB: > { %s1817_s13 = sadd.s32 4294967295, %s1738_s12   ;;  %s1164_s14 = sadd.s32 4294967294, %s1738_s12   ;;  %s1738_s12 = sphi %s1802_s12, %s1981_s12   ;;  %s1734_s11 = sphi %s1800_s11, %s1980_s11   ;;  %s1730_s10 = sphi %s1798_s10, %s1979_s10   ;;  %s1726_s30 = sphi %s1796_s30, %s1978_s30  }
   0x9   : > { %s1821_s15 = sadd.s32 1, %s1738_s12   ;;  %s230_s16 = sadd.s32 1, %s1734_s11 }
   0xa   : > { %s227_s17 = ssub.s32 %s1738_s12, %s1821_s15  ;;  %p240_p0 = scmp.ne.s32.totalorder %s1734_s11, %s1730_s10 }
   0xb   : > { %p228_p1 = scmp.eq.s32.totalorder %s227_s17, 0  ;;  %p241_p2 = scmp.eq.s32.totalorder %s1817_s13, 2 }
   0xc   : > { %p246_p3 = scmp.ne.s32.totalorder %s1730_s10, %s1726_s30  ;;  %p247_p4 = scmp.eq.s32.totalorder %s1164_s14, 2 }
   0xd   : > { %s1832_s18 = scalar_select %p228_p1, %s1734_s11, %s230_s16  }
   0xe   : > { %p1834_p5 = por %p241_p2, %p240_p0  ;;  %p1838_p6 = por %p247_p4, %p246_p3 }
   0xf   : > { %p1165_p7 = scmp.ge.s32.totalorder %s1738_s12, 1  ;;  %p254_p8 = scmp.lt.s32.totalorder %s1738_s12, 4 }
  0x10   : > { %p1565_p9 = scmp.eq.s32.totalorder %s1817_s13, 0  ;;  %s1976_s5 = sld [smem:[#allocation11_spill]] }
  0x11   : > { %p1845_p10 = pnand %p1165_p7, %p254_p8  ;;  %s1740_s25 = smov [#allocation2]  }
  0x12   : > { %s276_s26 = sshll.u32 %s1740_s25, 4  ;;  %s1977_s7 = sld [smem:[#allocation12_spill]]  ;;  %s277_s26 = int_to_ptr.vmem [resolvable:$true] %s276_s26 }
  0x13   : > { %p1554_p11 = pneg %p1845_p10  ;;  %s1741_s14 = smov 128  }
  0x14   : > { %s1742_s16 = smov 8   ;;  %s1743_s17 = smov [#allocation5]  }
  0x15   : > { %p1555_p12 = pnand %p1565_p9, %p1554_p11  ;;  %s293_s22 = sshll.u32 %s1743_s17, 4  ;;  %s294_s22 = int_to_ptr.vmem [resolvable:$true] %s293_s22 }
  0x16   : > { %s274_s24 = sshll.u32 %s1976_s5, 4  ;;  %330 = sbr.rel (%p1845_p10) target bundleno = 485 (0x1e5), region = 56  ;;  %s275_s24 = int_to_ptr.hbm [resolvable:$true] %s274_s24 }
  0x17   : > { %1557 = dma.hbm_to_vmem [thread:$0]  (!%p1555_p12), %s275_s24, 4096, %s277_s26, [#allocation3], %s1741_s14, %s1741_s14, %s1742_s16  }
  0x18   : > { %s291_s29 = sshll.u32 %s1977_s7, 4  ;;  %s292_s29 = int_to_ptr.hbm [resolvable:$true] %s291_s29 }
  0x19   : > { %1560 = dma.hbm_to_vmem [thread:$0]  (!%p1555_p12), %s292_s29, 4096, %s294_s22, [#allocation6], %s1741_s14, %s1741_s14, %s1742_s16  }
  0x1b   : > { %1713 = dma.done.wait (%p1565_p9), [#allocation3], 4096  }
  0x1c   : > { %1715 = vsyncadd (%p1565_p9), [#allocation3], 4294963200 }
  0x1d   : > { %1717 = dma.done.wait (%p1565_p9), [#allocation6], 4096  }
  0x1e   : > { %1719 = vsyncadd (%p1565_p9), [#allocation6], 4294963200  ;;  %s1173_s23 = sshll.u32 %s1817_s13, 1  ;;  %v1201_v0 = vld [vmem:[%s1963_s2 + $0x10] sm:$0xf]  ;;  %vm417_vm0 = vcmask 130048  }
  0x1f   : > { %p378_p13 = scmp.lt.s32.totalorder %s1173_s23, 5  ;;  %v1475_v1 = vld [vmem:[%s1963_s2 + $0x14] sm:$0xf0]  ;;  %v1474_v2 = vld [vmem:[%s1963_s2 + $0x14] sm:$0xf]  ;;  %vm469_vm1 = vcmask 261120  }
  0x20   : > { %v1202_v3 = vor.u32 %v1475_v1, %v1201_v0  ;;  %v1203_v4 = vld [vmem:[%s1963_s2 + $0x18] sm:$0xf0]  ;;  %v1183_v5 = vld [vmem:[%s1964_s3] sm:$0xf]  ;;  %v1477_v6 = vld [vmem:[%s1964_s3 + $0x4] sm:$0xf0] }
  0x21   : > { %s1983_s23 = smov (!%p378_p13, %s1173_s23), 5  ;;  %v1206_v7 = vor.u32 %v1474_v2, %v1203_v4  ;;  %v1184_v8 = vor.u32 %v1477_v6, %v1183_v5  ;;  %v1476_v9 = vld [vmem:[%s1964_s3 + $0x4] sm:$0xf]  ;;  %v1185_v10 = vld [vmem:[%s1964_s3 + $0x8] sm:$0xf0]  ;;  %s1543_s26 = sshll.u32 %s1817_s13, 5 }
  0x22   : > { %s1176_s24 = sshll.u32 %s1983_s23, 2  ;;  %s1174_s25 = sshll.u32 %s1983_s23, 3  ;;  %v1193_v11 = vld [vmem:[%s1963_s2] sm:$0xf]  ;;  %479 = vmatpush.bf16.msra.mxu2 %v1202_v3  ;;  %v1188_v12 = vor.u32 %v1476_v9, %v1185_v10  ;;  %v1473_v13 = vld [vmem:[%s1963_s2 + $0x4] sm:$0xf0] }
  0x23   : > { %s387_s28 = scalar_lea.vmem %s1962_s1, %s1176_s24  ;;  %s381_s14 = scalar_lea.vmem %s1961_s0, %s1174_s25  ;;  %v1472_v14 = vld [vmem:[%s1963_s2 + $0x4] sm:$0xf]  ;;  %v1195_v15 = vld [vmem:[%s1963_s2 + $0x8] sm:$0xf0]  ;;  %493 = vmatpush.bf16.msra.mxu3 %v1206_v7  ;;  %428 = vmatpush.bf16.msra.mxu0 %v1184_v8  ;;  %v1194_v16 = vor.u32 %v1473_v13, %v1193_v11  ;;  %v1267_v21 = vld [vmem:[#allocation2 + $0x70] sm:$0xf] }
  0x24   : > { %v1198_v17 = vor.u32 %v1472_v14, %v1195_v15  ;;  %v1471_v18 = vld [vmem:[%s387_s28] sm:$0xff]  ;;  %v392_v20 = vld [vmem:[%s381_s14 + $0x8] sm:$0xff]  ;;  %442 = vmatpush.bf16.msra.mxu1 %v1188_v12  ;;  %v1493_v22 = vld [vmem:[#allocation2 + $0x74] sm:$0xf0]  ;;  %s374_s23 = sand.u32 1, %s1730_s10   ;;  %s1064_s27 = scalar_lea.hbm %s1970_s9, %s1543_s26 }
  0x25   : > { %v391_v19 = vld [vmem:[%s381_s14] sm:$0xff]  ;;  %v1331_v23 = vld [vmem:[#allocation2 + $0xf0] sm:$0xf]  ;;  %v1268_v25 = vor.u32 %v1493_v22, %v1267_v21  ;;  %v1509_v26 = vld [vmem:[#allocation2 + $0xf4] sm:$0xf0]  ;;  %s1172_s21 = sshll.u32 %s374_s23, 5 }
  0x26   : > { %v393_v24 = vpack.c.bf16 %v392_v20, %v391_v19  ;;  %v1492_v27 = vld [vmem:[#allocation2 + $0x74] sm:$0xf]  ;;  %v1269_v28 = vld [vmem:[#allocation2 + $0x78] sm:$0xf0]  ;;  %480 = vmatpush.bf16.msra.mxu2 %v1194_v16  ;;  %1189 = vmatmul.msk.bf16.vlgmr.msra.gmra.mxu0 %vm417_vm0, %v1471_v18  ;;  %v1332_v29 = vor.u32 %v1509_v26, %v1331_v23  ;;  %v1259_v33 = vld [vmem:[#allocation2 + $0x60] sm:$0xf] }
  0x27   : > { %v1272_v30 = vor.u32 %v1492_v27, %v1269_v28  ;;  %v1508_v31 = vld [vmem:[#allocation2 + $0xf4] sm:$0xf]  ;;  %v1333_v32 = vld [vmem:[#allocation2 + $0xf8] sm:$0xf0]  ;;  %494 = vmatpush.bf16.msra.mxu3 %v1198_v17  ;;  %1190 = vmatmul.msk.bf16.vlgmr.msra.gmra.mxu1 %vm417_vm0, %v1471_v18  ;;  %v1491_v35 = vld [vmem:[#allocation2 + $0x64] sm:$0xf0] }
  0x28   : > { %v1336_v34 = vor.u32 %v1508_v31, %v1333_v32  ;;  %v1323_v36 = vld [vmem:[#allocation2 + $0xe0] sm:$0xf]  ;;  %v1507_v37 = vld [vmem:[#allocation2 + $0xe4] sm:$0xf0]  ;;  %723 = vmatpush.bf16.msrb.mxu0 %v1268_v25  ;;  %737 = vmatpush.bf16.msrb.mxu1 %v1332_v29  ;;  %v1260_v38 = vor.u32 %v1491_v35, %v1259_v33  ;;  %v1490_v40 = vld [vmem:[#allocation2 + $0x64] sm:$0xf] }
  0x29   : > { %v1324_v39 = vor.u32 %v1507_v37, %v1323_v36  ;;  %v1261_v41 = vld [vmem:[#allocation2 + $0x68] sm:$0xf0]  ;;  %v1506_v42 = vld [vmem:[#allocation2 + $0xe4] sm:$0xf]  ;;  %1207 = vmatmul.msk.bf16.vlgmr.msra.gmra.mxu2 %vm469_vm1, %v393_v24  ;;  %v1251_v46 = vld [vmem:[#allocation2 + $0x50] sm:$0xf] }
  0x2a   : > { %v1325_v43 = vld [vmem:[#allocation2 + $0xe8] sm:$0xf0]  ;;  %1208 = vmatmul.msk.bf16.vlgmr.msra.gmra.mxu3 %vm469_vm1, %v393_v24  ;;  %751 = vmatpush.bf16.msrb.mxu2 %v1272_v30  ;;  %v1264_v44 = vor.u32 %v1490_v40, %v1261_v41  ;;  %v1489_v47 = vld [vmem:[#allocation2 + $0x54] sm:$0xf0]  ;;  %v1315_v48 = vld [vmem:[#allocation2 + $0xd0] sm:$0xf] }
  0x2b   : > { %765 = vmatpush.bf16.msrb.mxu3 %v1336_v34  ;;  %v1328_v45 = vor.u32 %v1506_v42, %v1325_v43  ;;  %v1252_v49 = vor.u32 %v1489_v47, %v1251_v46  ;;  %v1505_v50 = vld [vmem:[#allocation2 + $0xd4] sm:$0xf0]  ;;  %v1488_v51 = vld [vmem:[#allocation2 + $0x54] sm:$0xf]  ;;  %v1253_v52 = vld [vmem:[#allocation2 + $0x58] sm:$0xf0] }
  0x2c   : > { %724 = vmatpush.bf16.msrb.mxu0 %v1260_v38  ;;  %738 = vmatpush.bf16.msrb.mxu1 %v1324_v39  ;;  %v1316_v53 = vor.u32 %v1505_v50, %v1315_v48  ;;  %v1256_v54 = vor.u32 %v1488_v51, %v1253_v52  ;;  %v1504_v55 = vld [vmem:[#allocation2 + $0xd4] sm:$0xf]  ;;  %v1317_v56 = vld [vmem:[#allocation2 + $0xd8] sm:$0xf0]  ;;  %v1243_v57 = vld [vmem:[#allocation2 + $0x40] sm:$0xf] }
  0x2d   : > { %v1320_v58 = vor.u32 %v1504_v55, %v1317_v56  ;;  %v1487_v59 = vld [vmem:[#allocation2 + $0x44] sm:$0xf0]  ;;  %v1307_v60 = vld [vmem:[#allocation2 + $0xc0] sm:$0xf]  ;;  %v1486_v0 = vld [vmem:[#allocation2 + $0x44] sm:$0xf] }
  0x2e   : > { %752 = vmatpush.bf16.msrb.mxu2 %v1264_v44  ;;  %v1503_v61 = vld [vmem:[#allocation2 + $0xc4] sm:$0xf0]  ;;  %v1244_v62 = vor.u32 %v1487_v59, %v1243_v57  ;;  %v1245_v1 = vld [vmem:[#allocation2 + $0x48] sm:$0xf0]  ;;  %v1502_v2 = vld [vmem:[#allocation2 + $0xc4] sm:$0xf] }
  0x2f   : > { %766 = vmatpush.bf16.msrb.mxu3 %v1328_v45  ;;  %v1308_v63 = vor.u32 %v1503_v61, %v1307_v60  ;;  %v1248_v3 = vor.u32 %v1486_v0, %v1245_v1  ;;  %v1309_v4 = vld [vmem:[#allocation2 + $0xc8] sm:$0xf0]  ;;  %v1235_v6 = vld [vmem:[#allocation2 + $0x30] sm:$0xf]  ;;  %v1485_v7 = vld [vmem:[#allocation2 + $0x34] sm:$0xf0] }
  0x30   : > { %725 = vmatpush.bf16.msrb.mxu0 %v1252_v49  ;;  %739 = vmatpush.bf16.msrb.mxu1 %v1316_v53  ;;  %v1312_v5 = vor.u32 %v1502_v2, %v1309_v4  ;;  %v1236_v8 = vor.u32 %v1485_v7, %v1235_v6  ;;  %v1299_v9 = vld [vmem:[#allocation2 + $0xb0] sm:$0xf]  ;;  %v1501_v10 = vld [vmem:[#allocation2 + $0xb4] sm:$0xf0]  ;;  %v1484_v12 = vld [vmem:[#allocation2 + $0x34] sm:$0xf] }
  0x31   : > { %v1300_v11 = vor.u32 %v1501_v10, %v1299_v9  ;;  %v1237_v13 = vld [vmem:[#allocation2 + $0x38] sm:$0xf0]  ;;  %v1500_v14 = vld [vmem:[#allocation2 + $0xb4] sm:$0xf]  ;;  %v1227_v18 = vld [vmem:[#allocation2 + $0x20] sm:$0xf] }
  0x32   : > { %753 = vmatpush.bf16.msrb.mxu2 %v1256_v54  ;;  %v1240_v15 = vor.u32 %v1484_v12, %v1237_v13  ;;  %v1301_v16 = vld [vmem:[#allocation2 + $0xb8] sm:$0xf0]  ;;  %v1483_v19 = vld [vmem:[#allocation2 + $0x24] sm:$0xf0]  ;;  %v1291_v20 = vld [vmem:[#allocation2 + $0xa0] sm:$0xf] }
  0x33   : > { %767 = vmatpush.bf16.msrb.mxu3 %v1320_v58  ;;  %v1304_v17 = vor.u32 %v1500_v14, %v1301_v16  ;;  %v1228_v21 = vor.u32 %v1483_v19, %v1227_v18  ;;  %v1499_v22 = vld [vmem:[#allocation2 + $0xa4] sm:$0xf0]  ;;  %v1482_v23 = vld [vmem:[#allocation2 + $0x24] sm:$0xf]  ;;  %v1229_v24 = vld [vmem:[#allocation2 + $0x28] sm:$0xf0] }
  0x34   : > { %726 = vmatpush.bf16.msrb.mxu0 %v1244_v62  ;;  %740 = vmatpush.bf16.msrb.mxu1 %v1308_v63  ;;  %v1292_v25 = vor.u32 %v1499_v22, %v1291_v20  ;;  %v1232_v26 = vor.u32 %v1482_v23, %v1229_v24  ;;  %v1498_v27 = vld [vmem:[#allocation2 + $0xa4] sm:$0xf]  ;;  %v1293_v28 = vld [vmem:[#allocation2 + $0xa8] sm:$0xf0]  ;;  %v1219_v30 = vld [vmem:[#allocation2 + $0x10] sm:$0xf] }
  0x35   : > { %v1296_v29 = vor.u32 %v1498_v27, %v1293_v28  ;;  %v1481_v31 = vld [vmem:[#allocation2 + $0x14] sm:$0xf0]  ;;  %v1283_v32 = vld [vmem:[#allocation2 + $0x90] sm:$0xf]  ;;  %v1480_v35 = vld [vmem:[#allocation2 + $0x14] sm:$0xf] }
  0x36   : > { %754 = vmatpush.bf16.msrb.mxu2 %v1248_v3  ;;  %v1220_v33 = vor.u32 %v1481_v31, %v1219_v30  ;;  %v1497_v34 = vld [vmem:[#allocation2 + $0x94] sm:$0xf0]  ;;  %v1221_v36 = vld [vmem:[#allocation2 + $0x18] sm:$0xf0]  ;;  %v1496_v39 = vld [vmem:[#allocation2 + $0x94] sm:$0xf] }
  0x37   : > { %768 = vmatpush.bf16.msrb.mxu3 %v1312_v5  ;;  %v1284_v37 = vor.u32 %v1497_v34, %v1283_v32  ;;  %v1224_v38 = vor.u32 %v1480_v35, %v1221_v36  ;;  %v1285_v40 = vld [vmem:[#allocation2 + $0x98] sm:$0xf0]  ;;  %v1211_v42 = vld [vmem:[#allocation2] sm:$0xf]  ;;  %v1479_v43 = vld [vmem:[#allocation2 + $0x4] sm:$0xf0] }
  0x38   : > { %727 = vmatpush.bf16.msrb.mxu0 %v1236_v8  ;;  %741 = vmatpush.bf16.msrb.mxu1 %v1300_v11  ;;  %v1288_v41 = vor.u32 %v1496_v39, %v1285_v40  ;;  %v1275_v44 = vld [vmem:[#allocation2 + $0x80] sm:$0xf]  ;;  %v1212_v45 = vor.u32 %v1479_v43, %v1211_v42  ;;  %v1495_v46 = vld [vmem:[#allocation2 + $0x84] sm:$0xf0]  ;;  %v1478_v47 = vld [vmem:[#allocation2 + $0x4] sm:$0xf] }
  0x39   : > { %v1213_v48 = vld [vmem:[#allocation2 + $0x8] sm:$0xf0]  ;;  %v1276_v49 = vor.u32 %v1495_v46, %v1275_v44  ;;  %v1494_v51 = vld [vmem:[#allocation2 + $0x84] sm:$0xf]  ;;  %v1395_v54 = vld [vmem:[#allocation5 + $0x70] sm:$0xf] }
  0x3a   : > { %755 = vmatpush.bf16.msrb.mxu2 %v1240_v15  ;;  %v1216_v50 = vor.u32 %v1478_v47, %v1213_v48  ;;  %v1277_v52 = vld [vmem:[#allocation2 + $0x88] sm:$0xf0]  ;;  %v1525_v55 = vld [vmem:[#allocation5 + $0x74] sm:$0xf0]  ;;  %v1524_v56 = vld [vmem:[#allocation5 + $0x74] sm:$0xf] }
  0x3b   : > { %769 = vmatpush.bf16.msrb.mxu3 %v1304_v17  ;;  %v1280_v53 = vor.u32 %v1494_v51, %v1277_v52  ;;  %v1396_v57 = vor.u32 %v1525_v55, %v1395_v54  ;;  %v1397_v58 = vld [vmem:[#allocation5 + $0x78] sm:$0xf0]  ;;  %v1387_v59 = vld [vmem:[#allocation5 + $0x60] sm:$0xf]  ;;  %v1523_v60 = vld [vmem:[#allocation5 + $0x64] sm:$0xf0] }
  0x3c   : > { %728 = vmatpush.bf16.msrb.mxu0 %v1228_v21  ;;  %742 = vmatpush.bf16.msrb.mxu1 %v1292_v25  ;;  %v1400_v61 = vor.u32 %v1524_v56, %v1397_v58  ;;  %v1522_v62 = vld [vmem:[#allocation5 + $0x64] sm:$0xf]  ;;  %v1389_v63 = vld [vmem:[#allocation5 + $0x68] sm:$0xf0]  ;;  %v1459_v0 = vld [vmem:[#allocation5 + $0xf0] sm:$0xf]  ;;  %v1388_v1 = vor.u32 %v1523_v60, %v1387_v59 }
  0x3d   : > { %v1541_v2 = vld [vmem:[#allocation5 + $0xf4] sm:$0xf0]  ;;  %v1540_v3 = vld [vmem:[#allocation5 + $0xf4] sm:$0xf]  ;;  %v1461_v4 = vld [vmem:[#allocation5 + $0xf8] sm:$0xf0]  ;;  %v1392_v5 = vor.u32 %v1522_v62, %v1389_v63 }
  0x3e   : > { %756 = vmatpush.bf16.msrb.mxu2 %v1232_v26  ;;  %v1460_v6 = vor.u32 %v1541_v2, %v1459_v0  ;;  %v1464_v7 = vor.u32 %v1540_v3, %v1461_v4  ;;  %v1379_v8 = vld [vmem:[#allocation5 + $0x50] sm:$0xf]  ;;  %v1521_v9 = vld [vmem:[#allocation5 + $0x54] sm:$0xf0]  ;;  %v1520_v10 = vld [vmem:[#allocation5 + $0x54] sm:$0xf] }
  0x3f   : > { %770 = vmatpush.bf16.msrb.mxu3 %v1296_v29  ;;  %v1381_v11 = vld [vmem:[#allocation5 + $0x58] sm:$0xf0]  ;;  %v1451_v12 = vld [vmem:[#allocation5 + $0xe0] sm:$0xf]  ;;  %v1539_v13 = vld [vmem:[#allocation5 + $0xe4] sm:$0xf0]  ;;  %v1380_v17 = vor.u32 %v1521_v9, %v1379_v8 }
  0x40   : > { %729 = vmatpush.bf16.msrb.mxu0 %v1220_v33  ;;  %743 = vmatpush.bf16.msrb.mxu1 %v1284_v37  ;;  %v1452_v14 = vor.u32 %v1539_v13, %v1451_v12  ;;  %v1538_v15 = vld [vmem:[#allocation5 + $0xe4] sm:$0xf]  ;;  %v1453_v16 = vld [vmem:[#allocation5 + $0xe8] sm:$0xf0]  ;;  %v1384_v19 = vor.u32 %v1520_v10, %v1381_v11  ;;  %v1371_v20 = vld [vmem:[#allocation5 + $0x40] sm:$0xf] }
  0x41   : > { %v1456_v18 = vor.u32 %v1538_v15, %v1453_v16  ;;  %v1519_v21 = vld [vmem:[#allocation5 + $0x44] sm:$0xf0]  ;;  %v1518_v22 = vld [vmem:[#allocation5 + $0x44] sm:$0xf]  ;;  %v1373_v23 = vld [vmem:[#allocation5 + $0x48] sm:$0xf0] }
  0x42   : > { %757 = vmatpush.bf16.msrb.mxu2 %v1224_v38  ;;  %v1372_v25 = vor.u32 %v1519_v21, %v1371_v20  ;;  %v1376_v27 = vor.u32 %v1518_v22, %v1373_v23  ;;  %v501_v29 = vld [vmem:[%s1965_s4] sm:$0x3]  ;;  %v1443_v55 = vld [vmem:[#allocation5 + $0xd0] sm:$0xf]  ;;  %v1537_v56 = vld [vmem:[#allocation5 + $0xd4] sm:$0xf0] }
  0x43   : > { %771 = vmatpush.bf16.msrb.mxu3 %v1288_v41  ;;  %v503_v32 = vperm.slane %v501_v29, 0  ;;  %v504_v34 = vperm.slane %v501_v29, 1  ;;  %v1444_v58 = vor.u32 %v1537_v56, %v1443_v55  ;;  %v1445_v59 = vld [vmem:[#allocation5 + $0xd8] sm:$0xf0]  ;;  %v1517_v62 = vld [vmem:[#allocation5 + $0x34] sm:$0xf0] }
  0x44   : > { %730 = vmatpush.bf16.msrb.mxu0 %v1212_v45  ;;  %744 = vmatpush.bf16.msrb.mxu1 %v1276_v49  ;;  %v1516_v63 = vld [vmem:[#allocation5 + $0x34] sm:$0xf]  ;;  %v1435_v3 = vld [vmem:[#allocation5 + $0xc0] sm:$0xf]  ;;  %v1535_v4 = vld [vmem:[#allocation5 + $0xc4] sm:$0xf0] }
  0x45   : > { %v1355_v9 = vld [vmem:[#allocation5 + $0x20] sm:$0xf]  ;;  %v1515_v10 = vld [vmem:[#allocation5 + $0x24] sm:$0xf0]  ;;  %v1514_v11 = vld [vmem:[#allocation5 + $0x24] sm:$0xf] }
  0x46   : > { %758 = vmatpush.bf16.msrb.mxu2 %v1216_v50  ;;  %v1356_v12 = vor.u32 %v1515_v10, %v1355_v9  ;;  %v1357_v13 = vld [vmem:[#allocation5 + $0x28] sm:$0xf0]  ;;  %v1427_v15 = vld [vmem:[#allocation5 + $0xb0] sm:$0xf]  ;;  %v1533_v16 = vld [vmem:[#allocation5 + $0xb4] sm:$0xf0] }
  0x47   : > { %772 = vmatpush.bf16.msrb.mxu3 %v1280_v53  ;;  %v1347_v21 = vld [vmem:[#allocation5 + $0x10] sm:$0xf]  ;;  %v1513_v22 = vld [vmem:[#allocation5 + $0x14] sm:$0xf0]  ;;  %v1512_v23 = vld [vmem:[#allocation5 + $0x14] sm:$0xf] }
  0x48   : > { %991 = vmatpush.bf16.msra.mxu0 %v1396_v57  ;;  %1005 = vmatpush.bf16.msra.mxu1 %v1460_v6  ;;  %v1536_v57 = vld [vmem:[#allocation5 + $0xd4] sm:$0xf]  ;;  %v1436_v6 = vor.u32 %v1535_v4, %v1435_v3  ;;  %v1530_v29 = vld [vmem:[#allocation5 + $0xa4] sm:$0xf]  ;;  %s376_s24 = scalar_lea.vmem [#allocation7], %s1172_s21  ;;  %s1067_s28 = sshll.u32 %s1064_s27, 4  ;;  %s1068_s28 = int_to_ptr.hbm [resolvable:$true] %s1067_s28 }
  0x49   : > { %v1448_v60 = vor.u32 %v1536_v57, %v1445_v59  ;;  %s1065_s29 = sshll.u32 %s376_s24, 4  ;;  %s1052_s13 = scalar_lea.sflag [#allocation4], %s374_s23  ;;  %s1066_s29 = int_to_ptr.vmem [resolvable:$true] %s1065_s29 }
  0x4a   : > { %1019 = vmatpush.bf16.msra.mxu2 %v1400_v61  ;;  %v1363_v61 = vld [vmem:[#allocation5 + $0x30] sm:$0xf]  ;;  %s1682_s14 = sshra.s32 %s1068_s28, 4  ;;  %s1688_s22 = scalar_lea.hbm %s1970_s9, 96  ;;  %s1683_s14 = int_to_ptr.hbm [resolvable:$true] %s1682_s14 }
  0x4b   : > { %1033 = vmatpush.bf16.msra.mxu3 %v1464_v7  ;;  %v1364_v0 = vor.u32 %v1517_v62, %v1363_v61  ;;  %v1437_v7 = vld [vmem:[#allocation5 + $0xc8] sm:$0xf0]  ;;  %s1684_s16 = scalar_lea.hbm %s1683_s14, 32  ;;  %p1689_p3 = scmp.lt.s32.totalorder %s1683_s14, %s1970_s9 }
  0x4c   : > { %992 = vmatpush.bf16.msra.mxu0 %v1388_v1  ;;  %1006 = vmatpush.bf16.msra.mxu1 %v1452_v14  ;;  %v1365_v1 = vld [vmem:[#allocation5 + $0x38] sm:$0xf0]  ;;  %v1360_v14 = vor.u32 %v1514_v11, %v1357_v13  ;;  %p1685_p0 = scmp.ne.s32.totalorder %s1683_s14, %s1684_s16  ;;  %p1690_p4 = scmp.lt.s32.totalorder %s1688_s22, %s1684_s16 }
  0x4d   : > { %v1368_v2 = vor.u32 %v1516_v63, %v1365_v1 }
  0x4e   : > { %1020 = vmatpush.bf16.msra.mxu2 %v1392_v5  ;;  %v1534_v5 = vld [vmem:[#allocation5 + $0xc4] sm:$0xf]  ;;  %p1686_p1 = pnand %p1685_p0, %p1834_p5  ;;  %p1691_p7 = por %p1690_p4, %p1689_p3 }
  0x4f   : > { %1034 = vmatpush.bf16.msra.mxu3 %v1456_v18  ;;  %v1440_v8 = vor.u32 %v1534_v5, %v1437_v7  ;;  %v1428_v18 = vor.u32 %v1533_v16, %v1427_v15  ;;  %v825_v16 = vld [vmem:[%s1969_s8] sm:$0x3] }
  0x50   : > { %993 = vmatpush.bf16.msra.mxu0 %v1380_v17  ;;  %1007 = vmatpush.bf16.msra.mxu1 %v1444_v58  ;;  %v1532_v17 = vld [vmem:[#allocation5 + $0xb4] sm:$0xf]  ;;  %p1687_p2 = pneg %p1686_p1 }
  0x52   : > { %1021 = vmatpush.bf16.msra.mxu2 %v1384_v19  ;;  %v1429_v19 = vld [vmem:[#allocation5 + $0xb8] sm:$0xf0]  ;;  %p1692_p8 = pnand %p1691_p7, %p1687_p2 }
  0x53   : > { %1035 = vmatpush.bf16.msra.mxu3 %v1448_v60  ;;  %v1432_v20 = vor.u32 %v1532_v17, %v1429_v19 }
  0x54   : > { %994 = vmatpush.bf16.msra.mxu0 %v1372_v25  ;;  %1008 = vmatpush.bf16.msra.mxu1 %v1436_v6  ;;  %v1349_v25 = vld [vmem:[#allocation5 + $0x18] sm:$0xf0] }
  0x56   : > { %1022 = vmatpush.bf16.msra.mxu2 %v1376_v27  ;;  %v1419_v27 = vld [vmem:[#allocation5 + $0xa0] sm:$0xf] }
  0x57   : > { %1036 = vmatpush.bf16.msra.mxu3 %v1440_v8 }
  0x58   : > { %995 = vmatpush.bf16.msra.mxu0 %v1364_v0  ;;  %1009 = vmatpush.bf16.msra.mxu1 %v1428_v18  ;;  %v827_v18 = vperm.slane %v825_v16, 0 }
  0x5a   : > { %1023 = vmatpush.bf16.msra.mxu2 %v1368_v2 }
  0x5b   : > { %1037 = vmatpush.bf16.msra.mxu3 %v1432_v20 }
  0x5c   : > { %996 = vmatpush.bf16.msra.mxu0 %v1356_v12 }
  0x5e   : > { %1024 = vmatpush.bf16.msra.mxu2 %v1360_v14 }
  0xa3   : > { %v430_v24 = vpop.f32.mrf.mxu0 }
  0xa4   : > { %v444_v26 = vpop.f32.mrf.mxu1 }
  0xab   : > { %v432_v36 = vpop.f32.mrf.mxu0 }
  0xac   : > { %v482_v28 = vpop.f32.mrf.mxu2  ;;  %v446_v39 = vpop.f32.mrf.mxu1 }
  0xad   : > { %v496_v30 = vpop.f32.mrf.mxu3  ;;  %v483_v31 = vadd.f32 %v482_v28, %v430_v24  ;;  %v1348_v24 = vor.u32 %v1513_v22, %v1347_v21  ;;  %v1531_v28 = vld [vmem:[#allocation5 + $0xa4] sm:$0xf0] }
  0xae   : > { %v497_v33 = vadd.f32 %v496_v30, %v444_v26  ;;  %v1352_v26 = vor.u32 %v1512_v23, %v1349_v25  ;;  %v1420_v30 = vor.u32 %v1531_v28, %v1419_v27  ;;  %v828_v23 = vperm.slane %v825_v16, 1 }
  0xaf   : > { %v507_v35 = vadd.f32 %v503_v32, %v483_v31  ;;  %997 = vmatpush.bf16.msra.mxu0 %v1348_v24  ;;  %v1421_v31 = vld [vmem:[#allocation5 + $0xa8] sm:$0xf0] }
  0xb0   : > { %v508_v37 = vadd.f32 %v504_v34, %v497_v33  ;;  %1025 = vmatpush.bf16.msra.mxu2 %v1352_v26  ;;  %v1339_v33 = vld [vmem:[#allocation5] sm:$0xf]  ;;  %1010 = vmatpush.bf16.msra.mxu1 %v1420_v30 }
  0xb1   : > { %v515_v43 = vmul.f32 0.2, %v507_v35  ;;  %vm511_vm2 = vcmp.gt.f32.partialorder %v507_v35, 0.0 }
  0xb2   : > { %v516_v45 = vmul.f32 0.2, %v508_v37  ;;  %vm512_vm3 = vcmp.gt.f32.partialorder %v508_v37, 0.0 }
  0xb3   : > { %v519_v49 = vsel %vm511_vm2, %v507_v35, %v515_v43  ;;  %v1510_v35 = vld [vmem:[#allocation5 + $0x4] sm:$0xf]  ;;  %v1413_v43 = vld [vmem:[#allocation5 + $0x98] sm:$0xf0] }
  0xb4   : > { %v484_v38 = vpop.f32.mrf.mxu2  ;;  %v520_v52 = vsel %vm512_vm3, %v508_v37, %v516_v45  ;;  %v1341_v37 = vld [vmem:[#allocation5 + $0x8] sm:$0xf0]  ;;  %v1403_v45 = vld [vmem:[#allocation5 + $0x80] sm:$0xf] }
  0xb5   : > { %v485_v40 = vadd.f32 %v484_v38, %v432_v36  ;;  %v498_v41 = vpop.f32.mrf.mxu3  ;;  %v1344_v38 = vor.u32 %v1510_v35, %v1341_v37 }
  0xb6   : > { %v499_v42 = vadd.f32 %v498_v41, %v446_v39  ;;  %v1411_v39 = vld [vmem:[#allocation5 + $0x90] sm:$0xf]  ;;  %v1528_v41 = vld [vmem:[#allocation5 + $0x94] sm:$0xf] }
  0xb7   : > { %v509_v44 = vadd.f32 %v503_v32, %v485_v40  ;;  %v1424_v32 = vor.u32 %v1530_v29, %v1421_v31  ;;  %v1529_v40 = vld [vmem:[#allocation5 + $0x94] sm:$0xf0]  ;;  %1026 = vmatpush.bf16.msra.mxu2 %v1344_v38 }
  0xb8   : > { %v510_v46 = vadd.f32 %v504_v34, %v499_v42  ;;  %v1511_v34 = vld [vmem:[#allocation5 + $0x4] sm:$0xf0]  ;;  %v1412_v42 = vor.u32 %v1529_v40, %v1411_v39 }
  0xb9   : > { %vm513_vm4 = vcmp.gt.f32.partialorder %v509_v44, 0.0  ;;  %v517_v47 = vmul.f32 0.2, %v509_v44  ;;  %v1340_v36 = vor.u32 %v1511_v34, %v1339_v33  ;;  %1038 = vmatpush.bf16.msra.mxu3 %v1424_v32 }
  0xba   : > { %vm514_vm5 = vcmp.gt.f32.partialorder %v510_v46, 0.0  ;;  %v518_v48 = vmul.f32 0.2, %v510_v46  ;;  %1011 = vmatpush.bf16.msra.mxu1 %v1412_v42 }
  0xbb   : > { %v521_v50 = vsel %vm513_vm4, %v509_v44, %v517_v47  ;;  %998 = vmatpush.bf16.msra.mxu0 %v1340_v36  ;;  %v1416_v44 = vor.u32 %v1528_v41, %v1413_v43  ;;  %v1526_v47 = vld [vmem:[#allocation5 + $0x84] sm:$0xf] }
  0xbc   : > { %v523_v51 = vpack.c.bf16 %v521_v50, %v519_v49  ;;  %v522_v53 = vsel %vm514_vm5, %v510_v46, %v518_v48  ;;  %v1527_v46 = vld [vmem:[#allocation5 + $0x84] sm:$0xf0]  ;;  %v1405_v49 = vld [vmem:[#allocation5 + $0x88] sm:$0xf0] }
  0xbd   : > { %v524_v54 = vpack.c.bf16 %v522_v53, %v520_v52  ;;  %1039 = vmatpush.bf16.msra.mxu3 %v1416_v44  ;;  %v1404_v48 = vor.u32 %v1527_v46, %v1403_v45  ;;  %v1408_v50 = vor.u32 %v1526_v47, %v1405_v49 }
  0xbe   : > { %731 = vmatmul.bf16.vlgmr.msrb.gmra.mxu0 %v523_v51  ;;  %759 = vmatmul.bf16.vlgmr.msrb.gmra.mxu2 %v523_v51  ;;  %v557_v51 = vld [vmem:[%s1967_s6] sm:$0x3] }
  0xbf   : > { %745 = vmatmul.bf16.vlgmr.msrb.gmra.mxu1 %v524_v54  ;;  %773 = vmatmul.bf16.vlgmr.msrb.gmra.mxu3 %v524_v54  ;;  %v559_v52 = vperm.slane %v557_v51, 0  ;;  %v560_v56 = vperm.slane %v557_v51, 1 }
  0xc0   : > { %1012 = vmatpush.bf16.msra.mxu1 %v1404_v48 }
  0xc1   : > { %1040 = vmatpush.bf16.msra.mxu3 %v1408_v50 }
 0x13b   : > { %v732_v53 = vpop.f32.mrf.mxu0 }
 0x13c   : > { %v746_v54 = vpop.f32.mrf.mxu1  ;;  %v733_v55 = vadd.f32 %v732_v53, %v559_v52 }
 0x13e   : > { %v747_v58 = vadd.f32 %v746_v54, %v733_v55 }
 0x140   : > { %v783_v0 = vmul.f32 0.2, %v747_v58  ;;  %vm779_vm6 = vcmp.gt.f32.partialorder %v747_v58, 0.0 }
 0x141   : > { %v760_v57 = vpop.f32.mrf.mxu2 }
 0x142   : > { %v774_v59 = vpop.f32.mrf.mxu3  ;;  %v761_v61 = vadd.f32 %v760_v57, %v560_v56  ;;  %v787_v5 = vsel %vm779_vm6, %v747_v58, %v783_v0 }
 0x143   : > { %v734_v60 = vpop.f32.mrf.mxu0 }
 0x144   : > { %v735_v62 = vadd.f32 %v734_v60, %v559_v52  ;;  %v748_v63 = vpop.f32.mrf.mxu1  ;;  %v775_v2 = vadd.f32 %v774_v59, %v761_v61 }
 0x146   : > { %v749_v1 = vadd.f32 %v748_v63, %v735_v62  ;;  %v784_v10 = vmul.f32 0.2, %v775_v2  ;;  %vm780_vm8 = vcmp.gt.f32.partialorder %v775_v2, 0.0 }
 0x148   : > { %vm781_vm7 = vcmp.gt.f32.partialorder %v749_v1, 0.0  ;;  %v785_v3 = vmul.f32 0.2, %v749_v1  ;;  %v788_v13 = vsel %vm780_vm8, %v775_v2, %v784_v10 }
 0x149   : > { %v762_v4 = vpop.f32.mrf.mxu2 }
 0x14a   : > { %v789_v6 = vsel %vm781_vm7, %v749_v1, %v785_v3  ;;  %v763_v7 = vadd.f32 %v762_v4, %v560_v56  ;;  %v776_v9 = vpop.f32.mrf.mxu3 }
 0x14b   : > { %v791_v8 = vpack.c.bf16 %v789_v6, %v787_v5 }
 0x14c   : > { %v777_v11 = vadd.f32 %v776_v9, %v763_v7 }
 0x14d   : > { %999 = vmatmul.bf16.vlgmr.msra.gmra.mxu0 %v791_v8  ;;  %1027 = vmatmul.bf16.vlgmr.msra.gmra.mxu2 %v791_v8 }
 0x14e   : > { %vm782_vm9 = vcmp.gt.f32.partialorder %v777_v11, 0.0  ;;  %v786_v12 = vmul.f32 0.2, %v777_v11 }
 0x150   : > { %v790_v14 = vsel %vm782_vm9, %v777_v11, %v786_v12 }
 0x151   : > { %v792_v15 = vpack.c.bf16 %v790_v14, %v788_v13 }
 0x153   : > { %1013 = vmatmul.bf16.vlgmr.msra.gmra.mxu1 %v792_v15  ;;  %1041 = vmatmul.bf16.vlgmr.msra.gmra.mxu3 %v792_v15 }
 0x1ca   : > { %v1000_v17 = vpop.f32.mrf.mxu0 }
 0x1cb   : > { %v1001_v19 = vadd.f32 %v1000_v17, %v827_v18 }
 0x1d0   : > { %v1014_v20 = vpop.f32.mrf.mxu1  ;;  %v1028_v21 = vpop.f32.mrf.mxu2 }
 0x1d1   : > { %v1015_v22 = vadd.f32 %v1014_v20, %v1001_v19  ;;  %v1029_v25 = vadd.f32 %v1028_v21, %v828_v23 }
 0x1d2   : > { %v1002_v24 = vpop.f32.mrf.mxu0 }
 0x1d3   : > { %1047 = vst [vmem:[%s376_s24] sm:$0xff] %v1015_v22  ;;  %v1003_v27 = vadd.f32 %v1002_v24, %v827_v18 }
 0x1d6   : > { %v1042_v26 = vpop.f32.mrf.mxu3 }
 0x1d7   : > { %v1043_v28 = vadd.f32 %v1042_v26, %v1029_v25 }
 0x1d8   : > { %v1016_v29 = vpop.f32.mrf.mxu1  ;;  %v1030_v31 = vpop.f32.mrf.mxu2 }
 0x1d9   : > { %1048 = vst [vmem:[%s376_s24 + $0x8] sm:$0xff] %v1043_v28  ;;  %v1017_v30 = vadd.f32 %v1016_v29, %v1003_v27  ;;  %v1031_v32 = vadd.f32 %v1030_v31, %v828_v23 }
 0x1db   : > { %1049 = vst [vmem:[%s376_s24 + $0x10] sm:$0xff] %v1017_v30 }
 0x1de   : > { %v1044_v33 = vpop.f32.mrf.mxu3 }
 0x1df   : > { %v1045_v34 = vadd.f32 %v1044_v33, %v1031_v32 }
 0x1e1   : > { %1050 = vst [vmem:[%s376_s24 + $0x18] sm:$0xff] %v1045_v34 }
 0x1e2   : > { %1695 = shalt.err (!%p1692_p8)
}
 0x1e3   : > { %s1744_s23 = smov 256   ;;  %s1745_s24 = smov 16  }
 0x1e4   : > { %1552 = dma.vmem_to_hbm [thread:$0]  (%p1834_p5), %s1066_s29, 512, %s1068_s28, %s1052_s13, %s1744_s23, %s1744_s23, %s1745_s24  }
 0x1e5 PF: > { %p1569_p9 = scmp.ge.s32.totalorder %s1738_s12, 2  ;;  %s1082_s7 = sand.u32 1, %s1726_s30  }
 0x1e6   : > { %s1083_s25 = scalar_lea.sflag [#allocation4], %s1082_s7 }
 0x1e7   : > { %p1562_p10 = pnand %p1569_p9, %p1838_p6 }
 0x1e9   : > { %p1563_p11 = pneg %p1562_p10 }
 0x1eb   : > { %1721 = dma.done.wait (%p1563_p11), %s1083_s25, 512  }
 0x1ec   : > { %1723 = vsyncadd (%p1563_p11), %s1083_s25, 4294966784  ;;  %p21_p12 = scmp.ge.s32.totalorder %s1821_s15, 5   ;;  %s1978_s30 = smov %s1730_s10 }
 0x1ed   : > { %s1979_s10 = smov %s1734_s11  ;;  %s1980_s11 = smov %s1832_s18 }
 0x1ee   : > { %s1981_s12 = smov %s1821_s15  ;;  %23 = sbr.rel (!%p21_p12) target bundleno = 8 (0x8), region = 103 }
 0x1f3   :  { %1089 = vsyncpa [#allocation3], 1 }
 0x1f4   :  { %1091 = vsyncpa [#allocation3 + $0x1], 1 }
 0x1f5   :  { %1092 = vsyncpa [#allocation6], 1 }
 0x1f6   :  { %1093 = vsyncpa [#allocation4], 1 }
 0x1f7   :  { %1095 = vsyncpa [#allocation4 + $0x1], 1 }

</bundles_post_ra>
